<compile_context>
chip_gen: v6e
topology: v6e:2x2x1
jax: 0.10.0
libtpu: 0.0.40
codegen_flags: <defaults>
</compile_context>

<pallas_src>
import jax
import jax.numpy as jnp
from jax.experimental import pallas as pl
from jax.experimental.pallas import tpu as pltpu


def _exp_kernel(x_ref, o_ref):
    # Whole-tile elementwise exp (EUP transcendental; pure HBM-streaming op).
    o_ref[...] = jnp.exp(x_ref[...])


_LANE_CANDIDATES = (1024, 512, 256, 128)
_TINY_BYPASS_BYTES = 64 * 1024       # below this, launch overhead > DMA time
_SPLIT_FOR_CORES_BYTES = 1 << 20     # keep grid >= 2 on medium tensors (v7x: 2 TCs)


def _default_block_bytes() -> int:
    """Generation-aware block size; resident VMEM ~= 4x this (in+out, 2-deep)."""
    try:
        kind = jax.devices()[0].device_kind.lower()
    except Exception:
        kind = ""
    if "v6" in kind or "v7" in kind:
        # 32 MiB scoped-VMEM default and fast HBM: 4 MiB blocks -> ~16 MiB resident.
        return 4 << 20
    # v5e (16 MiB scoped default) and older/unknown chips: stay conservative.
    return 2 << 20


def _exp_aligned_flat(flat: jax.Array, total: int) -> jax.Array:
    """Pallas exp over a flat array whose length is a multiple of 128."""
    dtype = flat.dtype
    itemsize = jnp.dtype(dtype).itemsize
    # Sublane packing granularity: 8 rows (4B), 16 (2B), 32 (1B dtypes).
    sublane = {4: 8, 2: 16, 1: 32}.get(itemsize, 8)

    # Lane-dense re-factorization.  Prefer a lane width whose row count is also
    # a multiple of the sublane packing so vregs and stores stay full-width.
    lanes = next((c for c in _LANE_CANDIDATES
                  if total % c == 0 and (total // c) % sublane == 0), None)
    if lanes is None:
        lanes = next(c for c in _LANE_CANDIDATES if total % c == 0)
    rows = total // lanes
    x2d = flat.reshape(rows, lanes)

    block_bytes = _default_block_bytes()
    max_block_rows = max(
        sublane, (block_bytes // (lanes * itemsize)) // sublane * sublane)

    if rows <= max_block_rows:
        block_rows = rows
        # Keep at least 2 grid steps on medium tensors so a v7x chip's second
        # TensorCore can participate and per-step overhead stays hidden.
        if total * itemsize >= _SPLIT_FOR_CORES_BYTES and rows >= 2 * sublane:
            half = (rows + 1) // 2
            block_rows = ((half + sublane - 1) // sublane) * sublane
    else:
        block_rows = max_block_rows

    grid = (pl.cdiv(rows, block_rows),)

    out2d = pl.pallas_call(
        _exp_kernel,
        out_shape=jax.ShapeDtypeStruct((rows, lanes), dtype),
        grid=grid,
        in_specs=[pl.BlockSpec((block_rows, lanes), lambda i: (i, 0))],
        out_specs=pl.BlockSpec((block_rows, lanes), lambda i: (i, 0)),
        compiler_params=pltpu.CompilerParams(
            dimension_semantics=("parallel",),
        ),
        cost_estimate=pl.CostEstimate(
            flops=0,
            transcendentals=total,
            bytes_accessed=2 * total * itemsize,
        ),
    )(x2d)
    return out2d.reshape(-1)


def pallas_exp(x: jax.Array) -> jax.Array:
    """Elementwise exp via a Pallas TPU kernel. Matches torch.exp(X) semantics."""
    orig_shape = x.shape
    total = x.size
    if total == 0:
        return x
    itemsize = jnp.dtype(x.dtype).itemsize

    # Tiny-input bypass: for small activations the fixed pallas_call launch and
    # grid overhead dominate; the XLA-fused exp is strictly faster.
    if total * itemsize < _TINY_BYPASS_BYTES:
        return jnp.exp(x)

    flat = x.reshape(-1)
    aligned = (total // 128) * 128
    if aligned == total:
        out_flat = _exp_aligned_flat(flat, total)
    else:
        # Ragged tail (<128 elements): run the kernel on the 128-aligned prefix
        # and compute the tail with plain exp.  This avoids the old
        # jnp.pad + final-slice round-trips (~3x the ideal HBM traffic).
        head = _exp_aligned_flat(flat[:aligned], aligned)
        tail = jnp.exp(flat[aligned:])
        out_flat = jnp.concatenate([head, tail])
    return out_flat.reshape(orig_shape)


if __name__ == "__main__":
    # _Exp has no parameters; just build deterministic inputs.
    key = jax.random.PRNGKey(0)
    k1, k2, k3 = jax.random.split(key, 3)

    # Spec-sized NCHW input (small -> exercises the tiny-input bypass path).
    x_small = jax.random.normal(k1, (2, 4, 16, 16), dtype=jnp.float32)
    y_small = pallas_exp(x_small)
    jax.block_until_ready(y_small)
    assert y_small.shape == x_small.shape and y_small.dtype == x_small.dtype
    assert jnp.allclose(y_small, jnp.exp(x_small), rtol=1e-6, atol=1e-6)

    # Larger 128-aligned input -> exercises the lane-dense Pallas path.
    x_big = jax.random.normal(k2, (2, 4, 128, 128), dtype=jnp.float32)
    y_big = pallas_exp(x_big)
    jax.block_until_ready(y_big)
    assert y_big.shape == x_big.shape and y_big.dtype == x_big.dtype
    assert jnp.allclose(y_big, jnp.exp(x_big), rtol=1e-6, atol=1e-6)

    # Ragged element count (not a multiple of 128) -> prefix kernel + tail exp.
    x_rag = jax.random.normal(k3, (3, 7, 1000), dtype=jnp.float32)
    y_rag = pallas_exp(x_rag)
    jax.block_until_ready(y_rag)
    assert y_rag.shape == x_rag.shape and y_rag.dtype == x_rag.dtype
    assert jnp.allclose(y_rag, jnp.exp(x_rag), rtol=1e-6, atol=1e-6)

    print("KERNEL_OK")
</pallas_src>

<mosaic_0001>
module attributes {stable_mosaic.version = 11 : i64} {
  func.func @_exp_kernel(%arg0: i32, %arg1: memref<128x1024xf32, #tpu.memory_space<vmem>>, %arg2: memref<128x1024xf32, #tpu.memory_space<vmem>>) attributes {dimension_semantics = [#tpu.dimension_semantics<parallel>], iteration_bounds = array<i64: 1>, scalar_prefetch = 0 : i64, scratch_operands = 0 : i64, tpu.core_type = #tpu.core_type<tc>, window_params = [{transform_indices = @transform_0, window_bounds = array<i64: 128, 1024>}, {transform_indices = @transform_1, window_bounds = array<i64: 128, 1024>}]} {
    %c0 = arith.constant 0 : index
    %c0_0 = arith.constant 0 : index
    %0 = vector.load %arg1[%c0, %c0_0] : memref<128x1024xf32, #tpu.memory_space<vmem>>, vector<128x1024xf32>
    %1 = math.exp %0 : vector<128x1024xf32>
    %c0_1 = arith.constant 0 : index
    %c0_2 = arith.constant 0 : index
    %2 = vector.load %arg2[%c0_1, %c0_2] : memref<128x1024xf32, #tpu.memory_space<vmem>>, vector<128x1024xf32>
    tpu.vector_store %arg2[%c0_1, %c0_2], %1 {strides = array<i32>} : memref<128x1024xf32, #tpu.memory_space<vmem>>, vector<128x1024xf32>,
    return
  }
  func.func @transform_0(%arg0: i32) -> (i32, i32) {
    %c0_i32 = arith.constant 0 : i32
    %c0_i32_0 = arith.constant 0 : i32
    return %arg0, %c0_i32 : i32, i32
  }
  func.func @transform_1(%arg0: i32) -> (i32, i32) {
    %c0_i32 = arith.constant 0 : i32
    %c0_i32_0 = arith.constant 0 : i32
    return %arg0, %c0_i32 : i32, i32
  }
}

</mosaic_0001>

<bundles_post_ra>
// kernel: tpu_custom_call.1
= control target key start
LH: loop header
LB: loop body
LE: loop exit
PB: predicated region body
PF: predicated region fallthrough
CT: control target
= control target key end

     0   :  { %6 = vsyncpa [#allocation3], 0  ;;  %s882_s0 = inlined_call_operand.hbm [shape: f32[128,1024], index: 0, kind: input, shape index: {}]   ;;  %s883_s1 = inlined_call_operand.hbm [shape: f32[128,1024], index: 1, kind: output, shape index: {}]  }
   0x1   :  { %7 = vsyncpa [#allocation4], 0  ;;  %s856_s6 = smov [#allocation2]  }
   0x2   :  { %s13_s7 = sshll.u32 %s856_s6, 4  ;;  %s14_s7 = int_to_ptr.vmem [resolvable:$true] %s13_s7 }
   0x3   :  { %s820_s8 = scalar_lea.vmem %s14_s7, 16384  ;;  %p825_p1 = scmp.lt.s32.totalorder %s14_s7, %s14_s7 }
   0x4   :  { %p821_p0 = scmp.ne.s32.totalorder %s14_s7, %s820_s8  ;;  %p826_p2 = scmp.lt.s32.totalorder %s820_s8, %s820_s8 }
   0x6   :  { %p827_p3 = por %p826_p2, %p825_p1 }
   0x8   :  { %p828_p4 = pnand %p827_p3, %p821_p0 }
   0xa   :  { %831 = shalt.err (!%p828_p4)
}
   0xb   :  { %s857_s9 = smov 1024   ;;  %s858_s10 = smov 64  }
   0xc   :  { %19 = dma.hbm_to_vmem [thread:$0]  %s882_s0, 16384, %s14_s7, [#allocation3], %s857_s9, %s857_s9, %s858_s10  }
   0xd   :  { %852 = dma.done.wait [#allocation3], 16384  }
   0xe   :  { %853 = vsyncadd [#allocation3], 4294950912  ;;  %v23_v0 = vld [vmem:[#allocation2] sm:$0xff]  ;;  %v24_v1 = vld [vmem:[#allocation2 + $0x8] sm:$0xff]  ;;  %s859_s0 = smov [#allocation5]  }
   0xf   :  { %v25_v2 = vld [vmem:[#allocation2 + $0x10] sm:$0xff]  ;;  %v151_v3 = vmul.f32 1.442695, %v23_v0  ;;  %v153_v4 = vmul.f32 1.442695, %v24_v1  ;;  %v26_v6 = vld [vmem:[#allocation2 + $0x18] sm:$0xff] }
  0x10   :  { %v155_v5 = vmul.f32 1.442695, %v25_v2  ;;  %v27_v7 = vld [vmem:[#allocation2 + $0x20] sm:$0xff]  ;;  %v28_v8 = vld [vmem:[#allocation2 + $0x28] sm:$0xff]  ;;  %v157_v9 = vmul.f32 1.442695, %v26_v6 }
  0x11   :  { %556 = vpow2.f32 %v151_v3  ;;  %v159_v10 = vmul.f32 1.442695, %v27_v7  ;;  %v161_v11 = vmul.f32 1.442695, %v28_v8  ;;  %v29_v12 = vld [vmem:[#allocation2 + $0x30] sm:$0xff]  ;;  %v30_v13 = vld [vmem:[#allocation2 + $0x38] sm:$0xff] }
  0x12   :  { %558 = vpow2.f32 %v153_v4  ;;  %v31_v14 = vld [vmem:[#allocation2 + $0x40] sm:$0xff]  ;;  %v163_v15 = vmul.f32 1.442695, %v29_v12  ;;  %v165_v16 = vmul.f32 1.442695, %v30_v13  ;;  %v32_v17 = vld [vmem:[#allocation2 + $0x48] sm:$0xff] }
  0x13   :  { %560 = vpow2.f32 %v155_v5  ;;  %v33_v18 = vld [vmem:[#allocation2 + $0x50] sm:$0xff]  ;;  %v167_v19 = vmul.f32 1.442695, %v31_v14  ;;  %v34_v20 = vld [vmem:[#allocation2 + $0x58] sm:$0xff]  ;;  %v169_v21 = vmul.f32 1.442695, %v32_v17 }
  0x14   :  { %562 = vpow2.f32 %v157_v9  ;;  %v35_v22 = vld [vmem:[#allocation2 + $0x60] sm:$0xff]  ;;  %v171_v23 = vmul.f32 1.442695, %v33_v18  ;;  %v36_v24 = vld [vmem:[#allocation2 + $0x68] sm:$0xff]  ;;  %v173_v25 = vmul.f32 1.442695, %v34_v20 }
  0x15   :  { %564 = vpow2.f32 %v159_v10  ;;  %v37_v26 = vld [vmem:[#allocation2 + $0x70] sm:$0xff]  ;;  %v175_v27 = vmul.f32 1.442695, %v35_v22  ;;  %v38_v28 = vld [vmem:[#allocation2 + $0x78] sm:$0xff]  ;;  %v177_v29 = vmul.f32 1.442695, %v36_v24 }
  0x16   :  { %566 = vpow2.f32 %v161_v11  ;;  %v39_v30 = vld [vmem:[#allocation2 + $0x80] sm:$0xff]  ;;  %v179_v31 = vmul.f32 1.442695, %v37_v26  ;;  %v40_v32 = vld [vmem:[#allocation2 + $0x88] sm:$0xff]  ;;  %v181_v33 = vmul.f32 1.442695, %v38_v28 }
  0x17   :  { %568 = vpow2.f32 %v163_v15  ;;  %v41_v34 = vld [vmem:[#allocation2 + $0x90] sm:$0xff]  ;;  %v183_v35 = vmul.f32 1.442695, %v39_v30  ;;  %v42_v36 = vld [vmem:[#allocation2 + $0x98] sm:$0xff]  ;;  %v185_v38 = vmul.f32 1.442695, %v40_v32 }
  0x18   :  { %570 = vpow2.f32 %v165_v16  ;;  %v43_v39 = vld [vmem:[#allocation2 + $0xa0] sm:$0xff]  ;;  %v187_v41 = vmul.f32 1.442695, %v41_v34  ;;  %v44_v42 = vld [vmem:[#allocation2 + $0xa8] sm:$0xff]  ;;  %v189_v44 = vmul.f32 1.442695, %v42_v36 }
  0x19   :  { %572 = vpow2.f32 %v167_v19  ;;  %v45_v45 = vld [vmem:[#allocation2 + $0xb0] sm:$0xff]  ;;  %v191_v47 = vmul.f32 1.442695, %v43_v39  ;;  %v46_v48 = vld [vmem:[#allocation2 + $0xb8] sm:$0xff]  ;;  %v193_v50 = vmul.f32 1.442695, %v44_v42 }
  0x1a   :  { %574 = vpow2.f32 %v169_v21  ;;  %v47_v51 = vld [vmem:[#allocation2 + $0xc0] sm:$0xff]  ;;  %v195_v53 = vmul.f32 1.442695, %v45_v45  ;;  %v48_v54 = vld [vmem:[#allocation2 + $0xc8] sm:$0xff]  ;;  %v197_v56 = vmul.f32 1.442695, %v46_v48 }
  0x1b   :  { %576 = vpow2.f32 %v171_v23  ;;  %v49_v57 = vld [vmem:[#allocation2 + $0xd0] sm:$0xff]  ;;  %v199_v59 = vmul.f32 1.442695, %v47_v51  ;;  %v50_v60 = vld [vmem:[#allocation2 + $0xd8] sm:$0xff]  ;;  %v201_v62 = vmul.f32 1.442695, %v48_v54 }
  0x1c   :  { %578 = vpow2.f32 %v173_v25  ;;  %v51_v63 = vld [vmem:[#allocation2 + $0xe0] sm:$0xff]  ;;  %v203_v1 = vmul.f32 1.442695, %v49_v57  ;;  %v52_v2 = vld [vmem:[#allocation2 + $0xe8] sm:$0xff]  ;;  %v205_v4 = vmul.f32 1.442695, %v50_v60 }
  0x1d   :  { %580 = vpow2.f32 %v175_v27  ;;  %v53_v5 = vld [vmem:[#allocation2 + $0xf0] sm:$0xff]  ;;  %v207_v7 = vmul.f32 1.442695, %v51_v63  ;;  %v54_v8 = vld [vmem:[#allocation2 + $0xf8] sm:$0xff]  ;;  %v209_v10 = vmul.f32 1.442695, %v52_v2 }
  0x1e   :  { %v557_v37 = vpop.eup %556  ;;  %582 = vpow2.f32 %v177_v29  ;;  %v55_v11 = vld [vmem:[#allocation2 + $0x100] sm:$0xff]  ;;  %v211_v13 = vmul.f32 1.442695, %v53_v5  ;;  %v56_v14 = vld [vmem:[#allocation2 + $0x108] sm:$0xff]  ;;  %v213_v16 = vmul.f32 1.442695, %v54_v8 }
  0x1f   :  { %v559_v40 = vpop.eup %558  ;;  %407 = vst [vmem:[#allocation5] sm:$0xff] %v557_v37  ;;  %584 = vpow2.f32 %v179_v31  ;;  %v57_v17 = vld [vmem:[#allocation2 + $0x110] sm:$0xff]  ;;  %v215_v19 = vmul.f32 1.442695, %v55_v11  ;;  %v58_v20 = vld [vmem:[#allocation2 + $0x118] sm:$0xff]  ;;  %v59_v23 = vld [vmem:[#allocation2 + $0x120] sm:$0xff] }
  0x20   :  { %v561_v43 = vpop.eup %560  ;;  %408 = vst [vmem:[#allocation5 + $0x8] sm:$0xff] %v559_v40  ;;  %586 = vpow2.f32 %v181_v33  ;;  %v217_v22 = vmul.f32 1.442695, %v56_v14  ;;  %v219_v25 = vmul.f32 1.442695, %v57_v17  ;;  %v60_v26 = vld [vmem:[#allocation2 + $0x128] sm:$0xff] }
  0x21   :  { %v563_v46 = vpop.eup %562  ;;  %409 = vst [vmem:[#allocation5 + $0x10] sm:$0xff] %v561_v43  ;;  %588 = vpow2.f32 %v183_v35  ;;  %v221_v28 = vmul.f32 1.442695, %v58_v20  ;;  %v61_v29 = vld [vmem:[#allocation2 + $0x130] sm:$0xff]  ;;  %v223_v31 = vmul.f32 1.442695, %v59_v23 }
  0x22   :  { %v565_v49 = vpop.eup %564  ;;  %410 = vst [vmem:[#allocation5 + $0x18] sm:$0xff] %v563_v46  ;;  %590 = vpow2.f32 %v185_v38  ;;  %v62_v32 = vld [vmem:[#allocation2 + $0x138] sm:$0xff]  ;;  %v225_v34 = vmul.f32 1.442695, %v60_v26  ;;  %v63_v35 = vld [vmem:[#allocation2 + $0x140] sm:$0xff]  ;;  %v64_v38 = vld [vmem:[#allocation2 + $0x148] sm:$0xff] }
  0x23   :  { %v567_v52 = vpop.eup %566  ;;  %411 = vst [vmem:[#allocation5 + $0x20] sm:$0xff] %v565_v49  ;;  %592 = vpow2.f32 %v187_v41  ;;  %v227_v37 = vmul.f32 1.442695, %v61_v29  ;;  %v229_v40 = vmul.f32 1.442695, %v62_v32  ;;  %v65_v41 = vld [vmem:[#allocation2 + $0x150] sm:$0xff] }
  0x24   :  { %v569_v55 = vpop.eup %568  ;;  %412 = vst [vmem:[#allocation5 + $0x28] sm:$0xff] %v567_v52  ;;  %594 = vpow2.f32 %v189_v44  ;;  %v231_v43 = vmul.f32 1.442695, %v63_v35  ;;  %v66_v44 = vld [vmem:[#allocation2 + $0x158] sm:$0xff]  ;;  %v233_v46 = vmul.f32 1.442695, %v64_v38 }
  0x25   :  { %v571_v58 = vpop.eup %570  ;;  %413 = vst [vmem:[#allocation5 + $0x30] sm:$0xff] %v569_v55  ;;  %596 = vpow2.f32 %v191_v47  ;;  %v67_v47 = vld [vmem:[#allocation2 + $0x160] sm:$0xff]  ;;  %v235_v49 = vmul.f32 1.442695, %v65_v41  ;;  %v237_v52 = vmul.f32 1.442695, %v66_v44 }
  0x26   :  { %v573_v61 = vpop.eup %572  ;;  %414 = vst [vmem:[#allocation5 + $0x38] sm:$0xff] %v571_v58  ;;  %598 = vpow2.f32 %v193_v50  ;;  %v68_v50 = vld [vmem:[#allocation2 + $0x168] sm:$0xff]  ;;  %v239_v55 = vmul.f32 1.442695, %v67_v47  ;;  %s540_s13 = sshll.u32 %s859_s0, 4  ;;  %s541_s13 = int_to_ptr.vmem [resolvable:$true] %s540_s13 }
  0x27   :  { %v575_v0 = vpop.eup %574  ;;  %415 = vst [vmem:[#allocation5 + $0x40] sm:$0xff] %v573_v61  ;;  %600 = vpow2.f32 %v195_v53  ;;  %v69_v53 = vld [vmem:[#allocation2 + $0x170] sm:$0xff]  ;;  %v241_v58 = vmul.f32 1.442695, %v68_v50  ;;  %s832_s14 = scalar_lea.vmem %s541_s13, 16384  ;;  %p837_p6 = scmp.lt.s32.totalorder %s541_s13, %s541_s13 }
  0x28   :  { %v577_v3 = vpop.eup %576  ;;  %416 = vst [vmem:[#allocation5 + $0x48] sm:$0xff] %v575_v0  ;;  %602 = vpow2.f32 %v197_v56  ;;  %v70_v56 = vld [vmem:[#allocation2 + $0x178] sm:$0xff]  ;;  %v243_v61 = vmul.f32 1.442695, %v69_v53  ;;  %p833_p5 = scmp.ne.s32.totalorder %s541_s13, %s832_s14  ;;  %p838_p7 = scmp.lt.s32.totalorder %s832_s14, %s832_s14 }
  0x29   :  { %v579_v6 = vpop.eup %578  ;;  %417 = vst [vmem:[#allocation5 + $0x50] sm:$0xff] %v577_v3  ;;  %604 = vpow2.f32 %v199_v59  ;;  %v71_v59 = vld [vmem:[#allocation2 + $0x180] sm:$0xff]  ;;  %v245_v0 = vmul.f32 1.442695, %v70_v56 }
  0x2a   :  { %v581_v9 = vpop.eup %580  ;;  %418 = vst [vmem:[#allocation5 + $0x58] sm:$0xff] %v579_v6  ;;  %606 = vpow2.f32 %v201_v62  ;;  %v72_v62 = vld [vmem:[#allocation2 + $0x188] sm:$0xff]  ;;  %v247_v3 = vmul.f32 1.442695, %v71_v59  ;;  %p839_p8 = por %p838_p7, %p837_p6 }
  0x2b   :  { %v583_v12 = vpop.eup %582  ;;  %419 = vst [vmem:[#allocation5 + $0x60] sm:$0xff] %v581_v9  ;;  %608 = vpow2.f32 %v203_v1  ;;  %v73_v1 = vld [vmem:[#allocation2 + $0x190] sm:$0xff]  ;;  %v249_v6 = vmul.f32 1.442695, %v72_v62 }
  0x2c   :  { %v585_v15 = vpop.eup %584  ;;  %420 = vst [vmem:[#allocation5 + $0x68] sm:$0xff] %v583_v12  ;;  %610 = vpow2.f32 %v205_v4  ;;  %v74_v4 = vld [vmem:[#allocation2 + $0x198] sm:$0xff]  ;;  %v251_v9 = vmul.f32 1.442695, %v73_v1  ;;  %p840_p9 = pnand %p839_p8, %p833_p5 }
  0x2d   :  { %v587_v18 = vpop.eup %586  ;;  %421 = vst [vmem:[#allocation5 + $0x70] sm:$0xff] %v585_v15  ;;  %612 = vpow2.f32 %v207_v7  ;;  %v75_v7 = vld [vmem:[#allocation2 + $0x1a0] sm:$0xff]  ;;  %v253_v12 = vmul.f32 1.442695, %v74_v4 }
  0x2e   :  { %v589_v21 = vpop.eup %588  ;;  %422 = vst [vmem:[#allocation5 + $0x78] sm:$0xff] %v587_v18  ;;  %614 = vpow2.f32 %v209_v10  ;;  %v76_v10 = vld [vmem:[#allocation2 + $0x1a8] sm:$0xff]  ;;  %v255_v15 = vmul.f32 1.442695, %v75_v7 }
  0x2f   :  { %v591_v24 = vpop.eup %590  ;;  %423 = vst [vmem:[#allocation5 + $0x80] sm:$0xff] %v589_v21  ;;  %616 = vpow2.f32 %v211_v13  ;;  %v77_v13 = vld [vmem:[#allocation2 + $0x1b0] sm:$0xff]  ;;  %v257_v18 = vmul.f32 1.442695, %v76_v10 }
  0x30   :  { %v593_v27 = vpop.eup %592  ;;  %424 = vst [vmem:[#allocation5 + $0x88] sm:$0xff] %v591_v24  ;;  %618 = vpow2.f32 %v213_v16  ;;  %v78_v16 = vld [vmem:[#allocation2 + $0x1b8] sm:$0xff]  ;;  %v259_v21 = vmul.f32 1.442695, %v77_v13 }
  0x31   :  { %v595_v30 = vpop.eup %594  ;;  %425 = vst [vmem:[#allocation5 + $0x90] sm:$0xff] %v593_v27  ;;  %620 = vpow2.f32 %v215_v19  ;;  %v79_v19 = vld [vmem:[#allocation2 + $0x1c0] sm:$0xff]  ;;  %v261_v24 = vmul.f32 1.442695, %v78_v16 }
  0x32   :  { %v597_v33 = vpop.eup %596  ;;  %426 = vst [vmem:[#allocation5 + $0x98] sm:$0xff] %v595_v30  ;;  %622 = vpow2.f32 %v217_v22  ;;  %v80_v22 = vld [vmem:[#allocation2 + $0x1c8] sm:$0xff]  ;;  %v263_v27 = vmul.f32 1.442695, %v79_v19 }
  0x33   :  { %v599_v36 = vpop.eup %598  ;;  %427 = vst [vmem:[#allocation5 + $0xa0] sm:$0xff] %v597_v33  ;;  %624 = vpow2.f32 %v219_v25  ;;  %v81_v25 = vld [vmem:[#allocation2 + $0x1d0] sm:$0xff]  ;;  %v265_v30 = vmul.f32 1.442695, %v80_v22 }
  0x34   :  { %v601_v39 = vpop.eup %600  ;;  %428 = vst [vmem:[#allocation5 + $0xa8] sm:$0xff] %v599_v36  ;;  %626 = vpow2.f32 %v221_v28  ;;  %v82_v28 = vld [vmem:[#allocation2 + $0x1d8] sm:$0xff]  ;;  %v267_v33 = vmul.f32 1.442695, %v81_v25 }
  0x35   :  { %v603_v42 = vpop.eup %602  ;;  %429 = vst [vmem:[#allocation5 + $0xb0] sm:$0xff] %v601_v39  ;;  %628 = vpow2.f32 %v223_v31  ;;  %v83_v31 = vld [vmem:[#allocation2 + $0x1e0] sm:$0xff]  ;;  %v269_v36 = vmul.f32 1.442695, %v82_v28 }
  0x36   :  { %v605_v45 = vpop.eup %604  ;;  %430 = vst [vmem:[#allocation5 + $0xb8] sm:$0xff] %v603_v42  ;;  %630 = vpow2.f32 %v225_v34  ;;  %v84_v34 = vld [vmem:[#allocation2 + $0x1e8] sm:$0xff]  ;;  %v271_v39 = vmul.f32 1.442695, %v83_v31 }
  0x37   :  { %v607_v48 = vpop.eup %606  ;;  %431 = vst [vmem:[#allocation5 + $0xc0] sm:$0xff] %v605_v45  ;;  %632 = vpow2.f32 %v227_v37  ;;  %v85_v37 = vld [vmem:[#allocation2 + $0x1f0] sm:$0xff]  ;;  %v273_v42 = vmul.f32 1.442695, %v84_v34 }
  0x38   :  { %v609_v51 = vpop.eup %608  ;;  %432 = vst [vmem:[#allocation5 + $0xc8] sm:$0xff] %v607_v48  ;;  %634 = vpow2.f32 %v229_v40  ;;  %v86_v40 = vld [vmem:[#allocation2 + $0x1f8] sm:$0xff]  ;;  %v275_v45 = vmul.f32 1.442695, %v85_v37 }
  0x39   :  { %v611_v54 = vpop.eup %610  ;;  %433 = vst [vmem:[#allocation5 + $0xd0] sm:$0xff] %v609_v51  ;;  %636 = vpow2.f32 %v231_v43  ;;  %v87_v43 = vld [vmem:[#allocation2 + $0x200] sm:$0xff]  ;;  %v277_v48 = vmul.f32 1.442695, %v86_v40 }
  0x3a   :  { %v613_v57 = vpop.eup %612  ;;  %434 = vst [vmem:[#allocation5 + $0xd8] sm:$0xff] %v611_v54  ;;  %638 = vpow2.f32 %v233_v46  ;;  %v88_v46 = vld [vmem:[#allocation2 + $0x208] sm:$0xff]  ;;  %v279_v51 = vmul.f32 1.442695, %v87_v43 }
  0x3b   :  { %v615_v60 = vpop.eup %614  ;;  %435 = vst [vmem:[#allocation5 + $0xe0] sm:$0xff] %v613_v57  ;;  %640 = vpow2.f32 %v235_v49  ;;  %v89_v49 = vld [vmem:[#allocation2 + $0x210] sm:$0xff]  ;;  %v281_v54 = vmul.f32 1.442695, %v88_v46 }
  0x3c   :  { %v617_v63 = vpop.eup %616  ;;  %436 = vst [vmem:[#allocation5 + $0xe8] sm:$0xff] %v615_v60  ;;  %642 = vpow2.f32 %v237_v52  ;;  %v90_v52 = vld [vmem:[#allocation2 + $0x218] sm:$0xff]  ;;  %v283_v57 = vmul.f32 1.442695, %v89_v49 }
  0x3d   :  { %v619_v2 = vpop.eup %618  ;;  %437 = vst [vmem:[#allocation5 + $0xf0] sm:$0xff] %v617_v63  ;;  %644 = vpow2.f32 %v239_v55  ;;  %v91_v55 = vld [vmem:[#allocation2 + $0x220] sm:$0xff]  ;;  %v285_v60 = vmul.f32 1.442695, %v90_v52 }
  0x3e   :  { %v621_v5 = vpop.eup %620  ;;  %438 = vst [vmem:[#allocation5 + $0xf8] sm:$0xff] %v619_v2  ;;  %646 = vpow2.f32 %v241_v58  ;;  %v92_v58 = vld [vmem:[#allocation2 + $0x228] sm:$0xff]  ;;  %v287_v63 = vmul.f32 1.442695, %v91_v55 }
  0x3f   :  { %v623_v8 = vpop.eup %622  ;;  %439 = vst [vmem:[#allocation5 + $0x100] sm:$0xff] %v621_v5  ;;  %648 = vpow2.f32 %v243_v61  ;;  %v93_v61 = vld [vmem:[#allocation2 + $0x230] sm:$0xff]  ;;  %v289_v2 = vmul.f32 1.442695, %v92_v58 }
  0x40   :  { %v625_v11 = vpop.eup %624  ;;  %440 = vst [vmem:[#allocation5 + $0x108] sm:$0xff] %v623_v8  ;;  %650 = vpow2.f32 %v245_v0  ;;  %v94_v0 = vld [vmem:[#allocation2 + $0x238] sm:$0xff]  ;;  %v291_v5 = vmul.f32 1.442695, %v93_v61 }
  0x41   :  { %v627_v14 = vpop.eup %626  ;;  %441 = vst [vmem:[#allocation5 + $0x110] sm:$0xff] %v625_v11  ;;  %652 = vpow2.f32 %v247_v3  ;;  %v95_v3 = vld [vmem:[#allocation2 + $0x240] sm:$0xff]  ;;  %v293_v8 = vmul.f32 1.442695, %v94_v0 }
  0x42   :  { %v629_v17 = vpop.eup %628  ;;  %442 = vst [vmem:[#allocation5 + $0x118] sm:$0xff] %v627_v14  ;;  %654 = vpow2.f32 %v249_v6  ;;  %v96_v6 = vld [vmem:[#allocation2 + $0x248] sm:$0xff]  ;;  %v295_v11 = vmul.f32 1.442695, %v95_v3 }
  0x43   :  { %v631_v20 = vpop.eup %630  ;;  %443 = vst [vmem:[#allocation5 + $0x120] sm:$0xff] %v629_v17  ;;  %656 = vpow2.f32 %v251_v9  ;;  %v97_v9 = vld [vmem:[#allocation2 + $0x250] sm:$0xff]  ;;  %v297_v14 = vmul.f32 1.442695, %v96_v6 }
  0x44   :  { %v633_v23 = vpop.eup %632  ;;  %444 = vst [vmem:[#allocation5 + $0x128] sm:$0xff] %v631_v20  ;;  %658 = vpow2.f32 %v253_v12  ;;  %v98_v12 = vld [vmem:[#allocation2 + $0x258] sm:$0xff]  ;;  %v299_v17 = vmul.f32 1.442695, %v97_v9 }
  0x45   :  { %v635_v26 = vpop.eup %634  ;;  %445 = vst [vmem:[#allocation5 + $0x130] sm:$0xff] %v633_v23  ;;  %660 = vpow2.f32 %v255_v15  ;;  %v99_v15 = vld [vmem:[#allocation2 + $0x260] sm:$0xff]  ;;  %v301_v20 = vmul.f32 1.442695, %v98_v12 }
  0x46   :  { %v637_v29 = vpop.eup %636  ;;  %446 = vst [vmem:[#allocation5 + $0x138] sm:$0xff] %v635_v26  ;;  %662 = vpow2.f32 %v257_v18  ;;  %v100_v18 = vld [vmem:[#allocation2 + $0x268] sm:$0xff]  ;;  %v303_v23 = vmul.f32 1.442695, %v99_v15 }
  0x47   :  { %v639_v32 = vpop.eup %638  ;;  %447 = vst [vmem:[#allocation5 + $0x140] sm:$0xff] %v637_v29  ;;  %664 = vpow2.f32 %v259_v21  ;;  %v101_v21 = vld [vmem:[#allocation2 + $0x270] sm:$0xff]  ;;  %v305_v26 = vmul.f32 1.442695, %v100_v18 }
  0x48   :  { %v641_v35 = vpop.eup %640  ;;  %448 = vst [vmem:[#allocation5 + $0x148] sm:$0xff] %v639_v32  ;;  %666 = vpow2.f32 %v261_v24  ;;  %v102_v24 = vld [vmem:[#allocation2 + $0x278] sm:$0xff]  ;;  %v307_v29 = vmul.f32 1.442695, %v101_v21 }
  0x49   :  { %v643_v38 = vpop.eup %642  ;;  %449 = vst [vmem:[#allocation5 + $0x150] sm:$0xff] %v641_v35  ;;  %668 = vpow2.f32 %v263_v27  ;;  %v103_v27 = vld [vmem:[#allocation2 + $0x280] sm:$0xff]  ;;  %v309_v32 = vmul.f32 1.442695, %v102_v24 }
  0x4a   :  { %v645_v41 = vpop.eup %644  ;;  %450 = vst [vmem:[#allocation5 + $0x158] sm:$0xff] %v643_v38  ;;  %670 = vpow2.f32 %v265_v30  ;;  %v104_v30 = vld [vmem:[#allocation2 + $0x288] sm:$0xff]  ;;  %v311_v35 = vmul.f32 1.442695, %v103_v27 }
  0x4b   :  { %v647_v44 = vpop.eup %646  ;;  %451 = vst [vmem:[#allocation5 + $0x160] sm:$0xff] %v645_v41  ;;  %672 = vpow2.f32 %v267_v33  ;;  %v105_v33 = vld [vmem:[#allocation2 + $0x290] sm:$0xff]  ;;  %v313_v38 = vmul.f32 1.442695, %v104_v30 }
  0x4c   :  { %v649_v47 = vpop.eup %648  ;;  %452 = vst [vmem:[#allocation5 + $0x168] sm:$0xff] %v647_v44  ;;  %674 = vpow2.f32 %v269_v36  ;;  %v106_v36 = vld [vmem:[#allocation2 + $0x298] sm:$0xff]  ;;  %v315_v41 = vmul.f32 1.442695, %v105_v33 }
  0x4d   :  { %v651_v50 = vpop.eup %650  ;;  %453 = vst [vmem:[#allocation5 + $0x170] sm:$0xff] %v649_v47  ;;  %676 = vpow2.f32 %v271_v39  ;;  %v107_v39 = vld [vmem:[#allocation2 + $0x2a0] sm:$0xff]  ;;  %v317_v44 = vmul.f32 1.442695, %v106_v36 }
  0x4e   :  { %v653_v53 = vpop.eup %652  ;;  %454 = vst [vmem:[#allocation5 + $0x178] sm:$0xff] %v651_v50  ;;  %678 = vpow2.f32 %v273_v42  ;;  %v108_v42 = vld [vmem:[#allocation2 + $0x2a8] sm:$0xff]  ;;  %v319_v47 = vmul.f32 1.442695, %v107_v39 }
  0x4f   :  { %v655_v56 = vpop.eup %654  ;;  %455 = vst [vmem:[#allocation5 + $0x180] sm:$0xff] %v653_v53  ;;  %680 = vpow2.f32 %v275_v45  ;;  %v109_v45 = vld [vmem:[#allocation2 + $0x2b0] sm:$0xff]  ;;  %v321_v50 = vmul.f32 1.442695, %v108_v42 }
  0x50   :  { %v657_v59 = vpop.eup %656  ;;  %456 = vst [vmem:[#allocation5 + $0x188] sm:$0xff] %v655_v56  ;;  %682 = vpow2.f32 %v277_v48  ;;  %v110_v48 = vld [vmem:[#allocation2 + $0x2b8] sm:$0xff]  ;;  %v323_v53 = vmul.f32 1.442695, %v109_v45 }
  0x51   :  { %v659_v62 = vpop.eup %658  ;;  %457 = vst [vmem:[#allocation5 + $0x190] sm:$0xff] %v657_v59  ;;  %684 = vpow2.f32 %v279_v51  ;;  %v111_v51 = vld [vmem:[#allocation2 + $0x2c0] sm:$0xff]  ;;  %v325_v56 = vmul.f32 1.442695, %v110_v48 }
  0x52   :  { %v661_v1 = vpop.eup %660  ;;  %458 = vst [vmem:[#allocation5 + $0x198] sm:$0xff] %v659_v62  ;;  %686 = vpow2.f32 %v281_v54  ;;  %v112_v54 = vld [vmem:[#allocation2 + $0x2c8] sm:$0xff]  ;;  %v327_v59 = vmul.f32 1.442695, %v111_v51 }
  0x53   :  { %v663_v4 = vpop.eup %662  ;;  %459 = vst [vmem:[#allocation5 + $0x1a0] sm:$0xff] %v661_v1  ;;  %688 = vpow2.f32 %v283_v57  ;;  %v113_v57 = vld [vmem:[#allocation2 + $0x2d0] sm:$0xff]  ;;  %v329_v62 = vmul.f32 1.442695, %v112_v54 }
  0x54   :  { %v665_v7 = vpop.eup %664  ;;  %460 = vst [vmem:[#allocation5 + $0x1a8] sm:$0xff] %v663_v4  ;;  %690 = vpow2.f32 %v285_v60  ;;  %v114_v60 = vld [vmem:[#allocation2 + $0x2d8] sm:$0xff]  ;;  %v331_v1 = vmul.f32 1.442695, %v113_v57 }
  0x55   :  { %v667_v10 = vpop.eup %666  ;;  %461 = vst [vmem:[#allocation5 + $0x1b0] sm:$0xff] %v665_v7  ;;  %692 = vpow2.f32 %v287_v63  ;;  %v115_v63 = vld [vmem:[#allocation2 + $0x2e0] sm:$0xff]  ;;  %v333_v4 = vmul.f32 1.442695, %v114_v60 }
  0x56   :  { %v669_v13 = vpop.eup %668  ;;  %462 = vst [vmem:[#allocation5 + $0x1b8] sm:$0xff] %v667_v10  ;;  %694 = vpow2.f32 %v289_v2  ;;  %v116_v2 = vld [vmem:[#allocation2 + $0x2e8] sm:$0xff]  ;;  %v335_v7 = vmul.f32 1.442695, %v115_v63 }
  0x57   :  { %v671_v16 = vpop.eup %670  ;;  %463 = vst [vmem:[#allocation5 + $0x1c0] sm:$0xff] %v669_v13  ;;  %696 = vpow2.f32 %v291_v5  ;;  %v117_v5 = vld [vmem:[#allocation2 + $0x2f0] sm:$0xff]  ;;  %v337_v10 = vmul.f32 1.442695, %v116_v2 }
  0x58   :  { %v673_v19 = vpop.eup %672  ;;  %464 = vst [vmem:[#allocation5 + $0x1c8] sm:$0xff] %v671_v16  ;;  %698 = vpow2.f32 %v293_v8  ;;  %v118_v8 = vld [vmem:[#allocation2 + $0x2f8] sm:$0xff]  ;;  %v339_v13 = vmul.f32 1.442695, %v117_v5 }
  0x59   :  { %v675_v22 = vpop.eup %674  ;;  %465 = vst [vmem:[#allocation5 + $0x1d0] sm:$0xff] %v673_v19  ;;  %700 = vpow2.f32 %v295_v11  ;;  %v119_v11 = vld [vmem:[#allocation2 + $0x300] sm:$0xff]  ;;  %v341_v16 = vmul.f32 1.442695, %v118_v8 }
  0x5a   :  { %v677_v25 = vpop.eup %676  ;;  %466 = vst [vmem:[#allocation5 + $0x1d8] sm:$0xff] %v675_v22  ;;  %702 = vpow2.f32 %v297_v14  ;;  %v120_v14 = vld [vmem:[#allocation2 + $0x308] sm:$0xff]  ;;  %v343_v19 = vmul.f32 1.442695, %v119_v11 }
  0x5b   :  { %v679_v28 = vpop.eup %678  ;;  %467 = vst [vmem:[#allocation5 + $0x1e0] sm:$0xff] %v677_v25  ;;  %704 = vpow2.f32 %v299_v17  ;;  %v121_v17 = vld [vmem:[#allocation2 + $0x310] sm:$0xff]  ;;  %v345_v22 = vmul.f32 1.442695, %v120_v14 }
  0x5c   :  { %v681_v31 = vpop.eup %680  ;;  %468 = vst [vmem:[#allocation5 + $0x1e8] sm:$0xff] %v679_v28  ;;  %706 = vpow2.f32 %v301_v20  ;;  %v122_v20 = vld [vmem:[#allocation2 + $0x318] sm:$0xff]  ;;  %v347_v25 = vmul.f32 1.442695, %v121_v17 }
  0x5d   :  { %v683_v34 = vpop.eup %682  ;;  %469 = vst [vmem:[#allocation5 + $0x1f0] sm:$0xff] %v681_v31  ;;  %708 = vpow2.f32 %v303_v23  ;;  %v123_v23 = vld [vmem:[#allocation2 + $0x320] sm:$0xff]  ;;  %v349_v28 = vmul.f32 1.442695, %v122_v20 }
  0x5e   :  { %v685_v37 = vpop.eup %684  ;;  %470 = vst [vmem:[#allocation5 + $0x1f8] sm:$0xff] %v683_v34  ;;  %710 = vpow2.f32 %v305_v26  ;;  %v124_v26 = vld [vmem:[#allocation2 + $0x328] sm:$0xff]  ;;  %v351_v31 = vmul.f32 1.442695, %v123_v23 }
  0x5f   :  { %v687_v40 = vpop.eup %686  ;;  %471 = vst [vmem:[#allocation5 + $0x200] sm:$0xff] %v685_v37  ;;  %712 = vpow2.f32 %v307_v29  ;;  %v125_v29 = vld [vmem:[#allocation2 + $0x330] sm:$0xff]  ;;  %v353_v34 = vmul.f32 1.442695, %v124_v26 }
  0x60   :  { %v689_v43 = vpop.eup %688  ;;  %472 = vst [vmem:[#allocation5 + $0x208] sm:$0xff] %v687_v40  ;;  %714 = vpow2.f32 %v309_v32  ;;  %v126_v32 = vld [vmem:[#allocation2 + $0x338] sm:$0xff]  ;;  %v355_v37 = vmul.f32 1.442695, %v125_v29 }
  0x61   :  { %v691_v46 = vpop.eup %690  ;;  %473 = vst [vmem:[#allocation5 + $0x210] sm:$0xff] %v689_v43  ;;  %716 = vpow2.f32 %v311_v35  ;;  %v127_v35 = vld [vmem:[#allocation2 + $0x340] sm:$0xff]  ;;  %v357_v40 = vmul.f32 1.442695, %v126_v32 }
  0x62   :  { %v693_v49 = vpop.eup %692  ;;  %474 = vst [vmem:[#allocation5 + $0x218] sm:$0xff] %v691_v46  ;;  %718 = vpow2.f32 %v313_v38  ;;  %v128_v38 = vld [vmem:[#allocation2 + $0x348] sm:$0xff]  ;;  %v359_v43 = vmul.f32 1.442695, %v127_v35 }
  0x63   :  { %v695_v52 = vpop.eup %694  ;;  %475 = vst [vmem:[#allocation5 + $0x220] sm:$0xff] %v693_v49  ;;  %720 = vpow2.f32 %v315_v41  ;;  %v129_v41 = vld [vmem:[#allocation2 + $0x350] sm:$0xff]  ;;  %v361_v46 = vmul.f32 1.442695, %v128_v38 }
  0x64   :  { %v697_v55 = vpop.eup %696  ;;  %476 = vst [vmem:[#allocation5 + $0x228] sm:$0xff] %v695_v52  ;;  %722 = vpow2.f32 %v317_v44  ;;  %v130_v44 = vld [vmem:[#allocation2 + $0x358] sm:$0xff]  ;;  %v363_v49 = vmul.f32 1.442695, %v129_v41 }
  0x65   :  { %v699_v58 = vpop.eup %698  ;;  %477 = vst [vmem:[#allocation5 + $0x230] sm:$0xff] %v697_v55  ;;  %724 = vpow2.f32 %v319_v47  ;;  %v131_v47 = vld [vmem:[#allocation2 + $0x360] sm:$0xff]  ;;  %v365_v52 = vmul.f32 1.442695, %v130_v44 }
  0x66   :  { %v701_v61 = vpop.eup %700  ;;  %478 = vst [vmem:[#allocation5 + $0x238] sm:$0xff] %v699_v58  ;;  %726 = vpow2.f32 %v321_v50  ;;  %v132_v50 = vld [vmem:[#allocation2 + $0x368] sm:$0xff]  ;;  %v367_v55 = vmul.f32 1.442695, %v131_v47 }
  0x67   :  { %v703_v0 = vpop.eup %702  ;;  %479 = vst [vmem:[#allocation5 + $0x240] sm:$0xff] %v701_v61  ;;  %728 = vpow2.f32 %v323_v53  ;;  %v133_v53 = vld [vmem:[#allocation2 + $0x370] sm:$0xff]  ;;  %v369_v58 = vmul.f32 1.442695, %v132_v50 }
  0x68   :  { %v705_v3 = vpop.eup %704  ;;  %480 = vst [vmem:[#allocation5 + $0x248] sm:$0xff] %v703_v0  ;;  %730 = vpow2.f32 %v325_v56  ;;  %v134_v56 = vld [vmem:[#allocation2 + $0x378] sm:$0xff]  ;;  %v371_v61 = vmul.f32 1.442695, %v133_v53 }
  0x69   :  { %v707_v6 = vpop.eup %706  ;;  %481 = vst [vmem:[#allocation5 + $0x250] sm:$0xff] %v705_v3  ;;  %732 = vpow2.f32 %v327_v59  ;;  %v135_v59 = vld [vmem:[#allocation2 + $0x380] sm:$0xff]  ;;  %v373_v0 = vmul.f32 1.442695, %v134_v56 }
  0x6a   :  { %v709_v9 = vpop.eup %708  ;;  %482 = vst [vmem:[#allocation5 + $0x258] sm:$0xff] %v707_v6  ;;  %734 = vpow2.f32 %v329_v62  ;;  %v136_v62 = vld [vmem:[#allocation2 + $0x388] sm:$0xff]  ;;  %v375_v3 = vmul.f32 1.442695, %v135_v59 }
  0x6b   :  { %v711_v12 = vpop.eup %710  ;;  %483 = vst [vmem:[#allocation5 + $0x260] sm:$0xff] %v709_v9  ;;  %736 = vpow2.f32 %v331_v1  ;;  %v137_v1 = vld [vmem:[#allocation2 + $0x390] sm:$0xff]  ;;  %v377_v6 = vmul.f32 1.442695, %v136_v62 }
  0x6c   :  { %v713_v15 = vpop.eup %712  ;;  %484 = vst [vmem:[#allocation5 + $0x268] sm:$0xff] %v711_v12  ;;  %738 = vpow2.f32 %v333_v4  ;;  %v138_v4 = vld [vmem:[#allocation2 + $0x398] sm:$0xff]  ;;  %v379_v9 = vmul.f32 1.442695, %v137_v1 }
  0x6d   :  { %v715_v18 = vpop.eup %714  ;;  %485 = vst [vmem:[#allocation5 + $0x270] sm:$0xff] %v713_v15  ;;  %740 = vpow2.f32 %v335_v7  ;;  %v139_v7 = vld [vmem:[#allocation2 + $0x3a0] sm:$0xff]  ;;  %v381_v12 = vmul.f32 1.442695, %v138_v4 }
  0x6e   :  { %v717_v21 = vpop.eup %716  ;;  %486 = vst [vmem:[#allocation5 + $0x278] sm:$0xff] %v715_v18  ;;  %742 = vpow2.f32 %v337_v10  ;;  %v140_v10 = vld [vmem:[#allocation2 + $0x3a8] sm:$0xff]  ;;  %v383_v15 = vmul.f32 1.442695, %v139_v7 }
  0x6f   :  { %v719_v24 = vpop.eup %718  ;;  %487 = vst [vmem:[#allocation5 + $0x280] sm:$0xff] %v717_v21  ;;  %744 = vpow2.f32 %v339_v13  ;;  %v141_v13 = vld [vmem:[#allocation2 + $0x3b0] sm:$0xff]  ;;  %v385_v18 = vmul.f32 1.442695, %v140_v10 }
  0x70   :  { %v721_v27 = vpop.eup %720  ;;  %488 = vst [vmem:[#allocation5 + $0x288] sm:$0xff] %v719_v24  ;;  %746 = vpow2.f32 %v341_v16  ;;  %v142_v16 = vld [vmem:[#allocation2 + $0x3b8] sm:$0xff]  ;;  %v387_v21 = vmul.f32 1.442695, %v141_v13 }
  0x71   :  { %v723_v30 = vpop.eup %722  ;;  %489 = vst [vmem:[#allocation5 + $0x290] sm:$0xff] %v721_v27  ;;  %748 = vpow2.f32 %v343_v19  ;;  %v143_v19 = vld [vmem:[#allocation2 + $0x3c0] sm:$0xff]  ;;  %v389_v24 = vmul.f32 1.442695, %v142_v16 }
  0x72   :  { %v725_v33 = vpop.eup %724  ;;  %490 = vst [vmem:[#allocation5 + $0x298] sm:$0xff] %v723_v30  ;;  %750 = vpow2.f32 %v345_v22  ;;  %v144_v22 = vld [vmem:[#allocation2 + $0x3c8] sm:$0xff]  ;;  %v391_v27 = vmul.f32 1.442695, %v143_v19 }
  0x73   :  { %v727_v36 = vpop.eup %726  ;;  %491 = vst [vmem:[#allocation5 + $0x2a0] sm:$0xff] %v725_v33  ;;  %752 = vpow2.f32 %v347_v25  ;;  %v145_v25 = vld [vmem:[#allocation2 + $0x3d0] sm:$0xff]  ;;  %v393_v30 = vmul.f32 1.442695, %v144_v22 }
  0x74   :  { %v729_v39 = vpop.eup %728  ;;  %492 = vst [vmem:[#allocation5 + $0x2a8] sm:$0xff] %v727_v36  ;;  %754 = vpow2.f32 %v349_v28  ;;  %v146_v28 = vld [vmem:[#allocation2 + $0x3d8] sm:$0xff]  ;;  %v395_v33 = vmul.f32 1.442695, %v145_v25 }
  0x75   :  { %v731_v42 = vpop.eup %730  ;;  %493 = vst [vmem:[#allocation5 + $0x2b0] sm:$0xff] %v729_v39  ;;  %756 = vpow2.f32 %v351_v31  ;;  %v147_v31 = vld [vmem:[#allocation2 + $0x3e0] sm:$0xff]  ;;  %v397_v36 = vmul.f32 1.442695, %v146_v28 }
  0x76   :  { %v733_v45 = vpop.eup %732  ;;  %494 = vst [vmem:[#allocation5 + $0x2b8] sm:$0xff] %v731_v42  ;;  %758 = vpow2.f32 %v353_v34  ;;  %v148_v34 = vld [vmem:[#allocation2 + $0x3e8] sm:$0xff]  ;;  %v399_v39 = vmul.f32 1.442695, %v147_v31 }
  0x77   :  { %v735_v48 = vpop.eup %734  ;;  %495 = vst [vmem:[#allocation5 + $0x2c0] sm:$0xff] %v733_v45  ;;  %760 = vpow2.f32 %v355_v37  ;;  %v149_v37 = vld [vmem:[#allocation2 + $0x3f0] sm:$0xff]  ;;  %v401_v42 = vmul.f32 1.442695, %v148_v34 }
  0x78   :  { %v737_v51 = vpop.eup %736  ;;  %496 = vst [vmem:[#allocation5 + $0x2c8] sm:$0xff] %v735_v48  ;;  %762 = vpow2.f32 %v357_v40  ;;  %v150_v40 = vld [vmem:[#allocation2 + $0x3f8] sm:$0xff]  ;;  %v403_v44 = vmul.f32 1.442695, %v149_v37 }
  0x79   :  { %v739_v54 = vpop.eup %738  ;;  %497 = vst [vmem:[#allocation5 + $0x2d0] sm:$0xff] %v737_v51  ;;  %764 = vpow2.f32 %v359_v43 }
  0x7a   :  { %v741_v57 = vpop.eup %740  ;;  %498 = vst [vmem:[#allocation5 + $0x2d8] sm:$0xff] %v739_v54  ;;  %766 = vpow2.f32 %v361_v46  ;;  %v405_v46 = vmul.f32 1.442695, %v150_v40 }
  0x7b   :  { %v743_v60 = vpop.eup %742  ;;  %499 = vst [vmem:[#allocation5 + $0x2e0] sm:$0xff] %v741_v57  ;;  %768 = vpow2.f32 %v363_v49 }
  0x7c   :  { %v745_v63 = vpop.eup %744  ;;  %500 = vst [vmem:[#allocation5 + $0x2e8] sm:$0xff] %v743_v60  ;;  %770 = vpow2.f32 %v365_v52 }
  0x7d   :  { %v747_v2 = vpop.eup %746  ;;  %501 = vst [vmem:[#allocation5 + $0x2f0] sm:$0xff] %v745_v63  ;;  %772 = vpow2.f32 %v367_v55 }
  0x7e   :  { %v749_v5 = vpop.eup %748  ;;  %502 = vst [vmem:[#allocation5 + $0x2f8] sm:$0xff] %v747_v2  ;;  %774 = vpow2.f32 %v369_v58 }
  0x7f   :  { %v751_v8 = vpop.eup %750  ;;  %503 = vst [vmem:[#allocation5 + $0x300] sm:$0xff] %v749_v5  ;;  %776 = vpow2.f32 %v371_v61 }
  0x80   :  { %v753_v11 = vpop.eup %752  ;;  %504 = vst [vmem:[#allocation5 + $0x308] sm:$0xff] %v751_v8  ;;  %778 = vpow2.f32 %v373_v0 }
  0x81   :  { %v755_v14 = vpop.eup %754  ;;  %505 = vst [vmem:[#allocation5 + $0x310] sm:$0xff] %v753_v11  ;;  %780 = vpow2.f32 %v375_v3 }
  0x82   :  { %v757_v17 = vpop.eup %756  ;;  %506 = vst [vmem:[#allocation5 + $0x318] sm:$0xff] %v755_v14  ;;  %782 = vpow2.f32 %v377_v6 }
  0x83   :  { %v759_v20 = vpop.eup %758  ;;  %507 = vst [vmem:[#allocation5 + $0x320] sm:$0xff] %v757_v17  ;;  %784 = vpow2.f32 %v379_v9 }
  0x84   :  { %v761_v23 = vpop.eup %760  ;;  %508 = vst [vmem:[#allocation5 + $0x328] sm:$0xff] %v759_v20  ;;  %786 = vpow2.f32 %v381_v12 }
  0x85   :  { %v763_v26 = vpop.eup %762  ;;  %509 = vst [vmem:[#allocation5 + $0x330] sm:$0xff] %v761_v23  ;;  %788 = vpow2.f32 %v383_v15 }
  0x86   :  { %v765_v29 = vpop.eup %764  ;;  %510 = vst [vmem:[#allocation5 + $0x338] sm:$0xff] %v763_v26  ;;  %790 = vpow2.f32 %v385_v18 }
  0x87   :  { %v767_v32 = vpop.eup %766  ;;  %511 = vst [vmem:[#allocation5 + $0x340] sm:$0xff] %v765_v29  ;;  %792 = vpow2.f32 %v387_v21 }
  0x88   :  { %v769_v35 = vpop.eup %768  ;;  %512 = vst [vmem:[#allocation5 + $0x348] sm:$0xff] %v767_v32  ;;  %794 = vpow2.f32 %v389_v24 }
  0x89   :  { %v771_v38 = vpop.eup %770  ;;  %513 = vst [vmem:[#allocation5 + $0x350] sm:$0xff] %v769_v35  ;;  %796 = vpow2.f32 %v391_v27 }
  0x8a   :  { %v773_v41 = vpop.eup %772  ;;  %514 = vst [vmem:[#allocation5 + $0x358] sm:$0xff] %v771_v38  ;;  %798 = vpow2.f32 %v393_v30 }
  0x8b   :  { %v775_v43 = vpop.eup %774  ;;  %515 = vst [vmem:[#allocation5 + $0x360] sm:$0xff] %v773_v41  ;;  %800 = vpow2.f32 %v395_v33 }
  0x8c   :  { %v777_v45 = vpop.eup %776  ;;  %516 = vst [vmem:[#allocation5 + $0x368] sm:$0xff] %v775_v43  ;;  %802 = vpow2.f32 %v397_v36 }
  0x8d   :  { %v779_v47 = vpop.eup %778  ;;  %517 = vst [vmem:[#allocation5 + $0x370] sm:$0xff] %v777_v45  ;;  %804 = vpow2.f32 %v399_v39 }
  0x8e   :  { %v781_v48 = vpop.eup %780  ;;  %518 = vst [vmem:[#allocation5 + $0x378] sm:$0xff] %v779_v47  ;;  %806 = vpow2.f32 %v401_v42 }
  0x8f   :  { %v783_v49 = vpop.eup %782  ;;  %519 = vst [vmem:[#allocation5 + $0x380] sm:$0xff] %v781_v48  ;;  %808 = vpow2.f32 %v403_v44 }
  0x90   :  { %v785_v50 = vpop.eup %784  ;;  %520 = vst [vmem:[#allocation5 + $0x388] sm:$0xff] %v783_v49  ;;  %810 = vpow2.f32 %v405_v46 }
  0x91   :  { %v787_v51 = vpop.eup %786  ;;  %521 = vst [vmem:[#allocation5 + $0x390] sm:$0xff] %v785_v50 }
  0x92   :  { %v789_v52 = vpop.eup %788  ;;  %522 = vst [vmem:[#allocation5 + $0x398] sm:$0xff] %v787_v51 }
  0x93   :  { %v791_v53 = vpop.eup %790  ;;  %523 = vst [vmem:[#allocation5 + $0x3a0] sm:$0xff] %v789_v52 }
  0x94   :  { %v793_v54 = vpop.eup %792  ;;  %524 = vst [vmem:[#allocation5 + $0x3a8] sm:$0xff] %v791_v53 }
  0x95   :  { %v795_v55 = vpop.eup %794  ;;  %525 = vst [vmem:[#allocation5 + $0x3b0] sm:$0xff] %v793_v54 }
  0x96   :  { %v797_v56 = vpop.eup %796  ;;  %526 = vst [vmem:[#allocation5 + $0x3b8] sm:$0xff] %v795_v55 }
  0x97   :  { %v799_v57 = vpop.eup %798  ;;  %527 = vst [vmem:[#allocation5 + $0x3c0] sm:$0xff] %v797_v56 }
  0x98   :  { %v801_v58 = vpop.eup %800  ;;  %528 = vst [vmem:[#allocation5 + $0x3c8] sm:$0xff] %v799_v57 }
  0x99   :  { %v803_v59 = vpop.eup %802  ;;  %529 = vst [vmem:[#allocation5 + $0x3d0] sm:$0xff] %v801_v58 }
  0x9a   :  { %v805_v60 = vpop.eup %804  ;;  %530 = vst [vmem:[#allocation5 + $0x3d8] sm:$0xff] %v803_v59 }
  0x9b   :  { %v807_v61 = vpop.eup %806  ;;  %531 = vst [vmem:[#allocation5 + $0x3e0] sm:$0xff] %v805_v60 }
  0x9c   :  { %v809_v62 = vpop.eup %808  ;;  %532 = vst [vmem:[#allocation5 + $0x3e8] sm:$0xff] %v807_v61 }
  0x9d   :  { %v811_v63 = vpop.eup %810  ;;  %533 = vst [vmem:[#allocation5 + $0x3f0] sm:$0xff] %v809_v62 }
  0x9e   :  { %534 = vst [vmem:[#allocation5 + $0x3f8] sm:$0xff] %v811_v63 }
  0x9f   :  { %843 = shalt.err (!%p840_p9)
}
  0xa0   :  { %546 = dma.vmem_to_hbm [thread:$0]  %s541_s13, 16384, %s883_s1, [#allocation4], %s857_s9, %s857_s9, %s858_s10  }
  0xa1   :  { %854 = dma.done.wait [#allocation4], 16384  }
  0xa2   :  { %855 = vsyncadd [#allocation4], 4294950912 }
  0xa3   :  { %550 = vsyncpa [#allocation3], 1 }
  0xa4   :  { %551 = vsyncpa [#allocation4], 1 }

</bundles_post_ra>
